<compile_context>
chip_gen: v7x
topology: tpu7x:2x2x1
jax: 0.10.0
libtpu: 0.0.40
codegen_flags: <defaults>
</compile_context>

<pallas_src>
import functools

import jax
import jax.numpy as jnp
from jax.experimental import pallas as pl
from jax.experimental.pallas import tpu as pltpu


# ---------------------------------------------------------------------------
# Kernel
# ---------------------------------------------------------------------------
def _make_seq_kernel(training: bool):
    """Build the fused-over-T LSTMCell kernel (with or without dropout masks)."""

    def _step(x, h, c, w, b, m_x=None, m_c=None, m_o=None):
        # x, h, c: (B, D) f32.  w: (2D, 4D) param dtype.  b: (1, 4D) f32.
        if training:
            x = x * m_x            # input_dropout(x_t)   (mask carries 1/(1-p) scale)
            c = c * m_c            # input_dropout(prev_c)
        xh = jnp.concatenate([x, h], axis=-1).astype(w.dtype)        # (B, 2D)
        gates = jnp.dot(xh, w, preferred_element_type=jnp.float32) + b  # (B, 4D)

        D = x.shape[-1]
        i_g = jax.nn.sigmoid(gates[:, 0 * D:1 * D])
        f_g = jax.nn.sigmoid(gates[:, 1 * D:2 * D])
        g_g = jnp.tanh(gates[:, 2 * D:3 * D])
        o_g = jax.nn.sigmoid(gates[:, 3 * D:4 * D])

        c_new = f_g * c + i_g * g_g
        h_new = o_g * jnp.tanh(c_new)
        out = h_new * m_o if training else h_new        # output_dropout(h1)
        return out, c_new

    def _body(x_ref, h0_ref, c0_ref, w_ref, b_ref, masks,
              out_ref, cfin_ref, h_scr, c_scr):
        t = pl.program_id(0)

        @pl.when(t == 0)
        def _():
            h_scr[...] = h0_ref[...].astype(jnp.float32)
            c_scr[...] = c0_ref[...].astype(jnp.float32)

        out, c_new = _step(x_ref[0].astype(jnp.float32),
                           h_scr[...], c_scr[...],
                           w_ref[...], b_ref[...], *masks)

        out_ref[0] = out.astype(out_ref.dtype)
        h_scr[...] = out          # fed back as prev_h at the next step
        c_scr[...] = c_new        # fed back as prev_c at the next step

        @pl.when(t == pl.num_programs(0) - 1)
        def _():
            cfin_ref[...] = c_new.astype(cfin_ref.dtype)

    if training:
        def kernel(x_ref, h0_ref, c0_ref, w_ref, b_ref,
                   mx_ref, mc_ref, mo_ref,
                   out_ref, cfin_ref, h_scr, c_scr):
            _body(x_ref, h0_ref, c0_ref, w_ref, b_ref,
                  (mx_ref[0], mc_ref[0], mo_ref[0]),
                  out_ref, cfin_ref, h_scr, c_scr)
    else:
        def kernel(x_ref, h0_ref, c0_ref, w_ref, b_ref,
                   out_ref, cfin_ref, h_scr, c_scr):
            _body(x_ref, h0_ref, c0_ref, w_ref, b_ref, (),
                  out_ref, cfin_ref, h_scr, c_scr)

    return kernel


# ---------------------------------------------------------------------------
# Wrappers
# ---------------------------------------------------------------------------
def _dropout_mask(key, shape, p):
    """Inverted-dropout keep-mask (already scaled by 1/(1-p))."""
    if p <= 0.0:
        return jnp.ones(shape, jnp.float32)
    keep = jax.random.bernoulli(key, 1.0 - p, shape).astype(jnp.float32)
    return keep * jnp.float32(1.0 / (1.0 - p))


@functools.partial(jax.jit, static_argnames=("p_in", "p_out", "training"))
def my_rnn_block_seq(x_seq, h0, c0, w_ih, w_hh, b_ih, b_hh, seed=0,
                     *, p_in=0.2, p_out=0.2, training=False):
    """Run MyRNNBlock over a whole sequence in a single pallas_call.

    x_seq : (T, B, D);  h0, c0 : (B, D)
    w_ih, w_hh : (4D, D) PyTorch LSTMCell layout (gate order i,f,g,o)
    b_ih, b_hh : (4D,)
    Returns (outputs, c_final): outputs (T, B, D) = post-dropout h per step,
    c_final (B, D) = final cell state.
    """
    T, B, D = x_seq.shape
    param_dt = w_ih.dtype
    # Hoisted weight prep (once per call, amortized over all T steps):
    w_cat = jnp.concatenate([jnp.transpose(w_ih), jnp.transpose(w_hh)],
                            axis=0).astype(param_dt)                 # (2D, 4D)
    bias = (b_ih.astype(jnp.float32)
            + b_hh.astype(jnp.float32)).reshape(1, 4 * D)            # (1, 4D)

    kernel = _make_seq_kernel(bool(training))

    in_specs = [
        pl.BlockSpec((1, B, D), lambda t: (t, 0, 0)),        # x_t (streamed per step)
        pl.BlockSpec((B, D), lambda t: (0, 0)),              # h0  (resident)
        pl.BlockSpec((B, D), lambda t: (0, 0)),              # c0  (resident)
        pl.BlockSpec((2 * D, 4 * D), lambda t: (0, 0)),      # W_cat (resident, DMA'd once)
        pl.BlockSpec((1, 4 * D), lambda t: (0, 0)),          # fused bias (resident)
    ]
    args = [x_seq, h0, c0, w_cat, bias]

    if training:
        key = jax.random.PRNGKey(seed)
        kx, kc, ko = jax.random.split(key, 3)
        args += [_dropout_mask(kx, (T, B, D), float(p_in)),
                 _dropout_mask(kc, (T, B, D), float(p_in)),
                 _dropout_mask(ko, (T, B, D), float(p_out))]
        in_specs += [pl.BlockSpec((1, B, D), lambda t: (t, 0, 0)) for _ in range(3)]

    outputs, c_final = pl.pallas_call(
        kernel,
        out_shape=(jax.ShapeDtypeStruct((T, B, D), x_seq.dtype),
                   jax.ShapeDtypeStruct((B, D), x_seq.dtype)),
        grid=(T,),
        in_specs=in_specs,
        out_specs=(pl.BlockSpec((1, B, D), lambda t: (t, 0, 0)),
                   pl.BlockSpec((B, D), lambda t: (0, 0))),
        scratch_shapes=[pltpu.VMEM((B, D), jnp.float32),     # carried h
                        pltpu.VMEM((B, D), jnp.float32)],    # carried c
        compiler_params=pltpu.CompilerParams(
            dimension_semantics=("arbitrary",)),              # sequential recurrence
    )(*args)
    return outputs, c_final


def my_rnn_block(x_t, prev_h, prev_c, w_ih, w_hh, b_ih, b_hh, seed=0,
                 *, p_in=0.2, p_out=0.2, training=False):
    """Single-step MyRNNBlock.forward (thin wrapper over the fused kernel, T=1)."""
    outputs, c_new = my_rnn_block_seq(x_t[None], prev_h, prev_c,
                                      w_ih, w_hh, b_ih, b_hh, seed,
                                      p_in=p_in, p_out=p_out, training=training)
    return outputs[0], c_new


# ---------------------------------------------------------------------------
# Pure-JAX reference (eval mode: dropout = identity)
# ---------------------------------------------------------------------------
def _reference_step(x, h, c, w_ih, w_hh, b_ih, b_hh):
    gates = x @ w_ih.T + b_ih + h @ w_hh.T + b_hh
    D = x.shape[-1]
    i = jax.nn.sigmoid(gates[:, 0 * D:1 * D])
    f = jax.nn.sigmoid(gates[:, 1 * D:2 * D])
    g = jnp.tanh(gates[:, 2 * D:3 * D])
    o = jax.nn.sigmoid(gates[:, 3 * D:4 * D])
    c_new = f * c + i * g
    h_new = o * jnp.tanh(c_new)
    return h_new, c_new


if __name__ == "__main__":
    # Small shapes consistent with the module (rnn_dim -> 32, batch -> 8, seq -> 8).
    B, D, T = 8, 32, 8
    key = jax.random.PRNGKey(0)
    k = jax.random.split(key, 8)

    # nn.LSTMCell-style init: U(-1/sqrt(D), 1/sqrt(D)).
    bound = 1.0 / (D ** 0.5)
    w_ih = jax.random.uniform(k[0], (4 * D, D), jnp.float32, -bound, bound)
    w_hh = jax.random.uniform(k[1], (4 * D, D), jnp.float32, -bound, bound)
    b_ih = jax.random.uniform(k[2], (4 * D,), jnp.float32, -bound, bound)
    b_hh = jax.random.uniform(k[3], (4 * D,), jnp.float32, -bound, bound)

    x_seq = jax.random.normal(k[4], (T, B, D), jnp.float32)
    h0 = jax.random.normal(k[5], (B, D), jnp.float32)
    c0 = jax.random.normal(k[6], (B, D), jnp.float32)

    # --- Single-step eval check (exact module forward semantics) ---------------
    out1, c1 = my_rnn_block(x_seq[0], h0, c0, w_ih, w_hh, b_ih, b_hh,
                            p_in=0.2, p_out=0.2, training=False)
    jax.block_until_ready((out1, c1))
    ref_h1, ref_c1 = _reference_step(x_seq[0], h0, c0, w_ih, w_hh, b_ih, b_hh)
    assert jnp.allclose(out1, ref_h1, atol=2e-5, rtol=2e-5), "single-step output mismatch"
    assert jnp.allclose(c1, ref_c1, atol=2e-5, rtol=2e-5), "single-step cell-state mismatch"

    # --- Fused sequence eval check ---------------------------------------------
    outs, c_fin = my_rnn_block_seq(x_seq, h0, c0, w_ih, w_hh, b_ih, b_hh,
                                   p_in=0.2, p_out=0.2, training=False)
    jax.block_until_ready((outs, c_fin))
    h, c = h0, c0
    ref_outs = []
    for t in range(T):
        h, c = _reference_step(x_seq[t], h, c, w_ih, w_hh, b_ih, b_hh)
        ref_outs.append(h)
    ref_outs = jnp.stack(ref_outs)
    assert jnp.allclose(outs, ref_outs, atol=2e-5, rtol=2e-5), "sequence output mismatch"
    assert jnp.allclose(c_fin, c, atol=2e-5, rtol=2e-5), "sequence final-c mismatch"

    # --- Training-mode path (mask-based inverted dropout; per-step masks) ------
    # TODO(synk): torch's dropout RNG stream cannot be bit-matched; masks come from
    #             jax.random with the same keep-probability / scaling semantics.
    outs_tr, c_tr = my_rnn_block_seq(x_seq, h0, c0, w_ih, w_hh, b_ih, b_hh,
                                     seed=1234, p_in=0.2, p_out=0.2, training=True)
    jax.block_until_ready((outs_tr, c_tr))
    assert bool(jnp.all(jnp.isfinite(outs_tr))) and bool(jnp.all(jnp.isfinite(c_tr)))

    print("KERNEL_OK")
</pallas_src>

<mosaic_0001>
module attributes {stable_mosaic.version = 11 : i64} {
  func.func @kernel(%arg0: i32, %arg1: memref<1x8x32xf32, #tpu.memory_space<vmem>>, %arg2: memref<8x32xf32, #tpu.memory_space<vmem>>, %arg3: memref<8x32xf32, #tpu.memory_space<vmem>>, %arg4: memref<64x128xf32, #tpu.memory_space<vmem>>, %arg5: memref<1x128xf32, #tpu.memory_space<vmem>>, %arg6: memref<1x8x32xf32, #tpu.memory_space<vmem>>, %arg7: memref<8x32xf32, #tpu.memory_space<vmem>>, %arg8: memref<8x32xf32, #tpu.memory_space<vmem>>, %arg9: memref<8x32xf32, #tpu.memory_space<vmem>>) attributes {dimension_semantics = [#tpu.dimension_semantics<arbitrary>], iteration_bounds = array<i64: 1>, scalar_prefetch = 0 : i64, scratch_operands = 2 : i64, tpu.core_type = #tpu.core_type<tc>, window_params = [{transform_indices = @transform_0, window_bounds = array<i64: 1, 8, 32>}, {pipeline_mode = #tpu.pipeline_mode<synchronous>, transform_indices = @transform_1, window_bounds = array<i64: 8, 32>}, {pipeline_mode = #tpu.pipeline_mode<synchronous>, transform_indices = @transform_2, window_bounds = array<i64: 8, 32>}, {pipeline_mode = #tpu.pipeline_mode<synchronous>, transform_indices = @transform_3, window_bounds = array<i64: 64, 128>}, {pipeline_mode = #tpu.pipeline_mode<synchronous>, transform_indices = @transform_4, window_bounds = array<i64: 1, 128>}, {transform_indices = @transform_5, window_bounds = array<i64: 1, 8, 32>}, {pipeline_mode = #tpu.pipeline_mode<synchronous>, transform_indices = @transform_6, window_bounds = array<i64: 8, 32>}]} {
    %c0_i32 = arith.constant 0 : i32
    %0 = arith.cmpi eq, %arg0, %c0_i32 : i32
    %1 = arith.extui %0 : i1 to i32
    %c0_i32_0 = arith.constant 0 : i32
    %2 = arith.cmpi ne, %1, %c0_i32_0 : i32
    scf.if %2 {
      %c0_23 = arith.constant 0 : index
      %c0_24 = arith.constant 0 : index
      %46 = vector.load %arg2[%c0_23, %c0_24] : memref<8x32xf32, #tpu.memory_space<vmem>>, vector<8x32xf32>
      %c0_25 = arith.constant 0 : index
      %c0_26 = arith.constant 0 : index
      %47 = vector.load %arg8[%c0_25, %c0_26] : memref<8x32xf32, #tpu.memory_space<vmem>>, vector<8x32xf32>
      tpu.vector_store %arg8[%c0_25, %c0_26], %46 {strides = array<i32>} : memref<8x32xf32, #tpu.memory_space<vmem>>, vector<8x32xf32>,
      %c0_27 = arith.constant 0 : index
      %c0_28 = arith.constant 0 : index
      %48 = vector.load %arg3[%c0_27, %c0_28] : memref<8x32xf32, #tpu.memory_space<vmem>>, vector<8x32xf32>
      %c0_29 = arith.constant 0 : index
      %c0_30 = arith.constant 0 : index
      %49 = vector.load %arg9[%c0_29, %c0_30] : memref<8x32xf32, #tpu.memory_space<vmem>>, vector<8x32xf32>
      tpu.vector_store %arg9[%c0_29, %c0_30], %48 {strides = array<i32>} : memref<8x32xf32, #tpu.memory_space<vmem>>, vector<8x32xf32>,
    } else {
    }
    %c0 = arith.constant 0 : index
    %c0_1 = arith.constant 0 : index
    %c0_2 = arith.constant 0 : index
    %3 = vector.load %arg1[%c0, %c0_1, %c0_2] : memref<1x8x32xf32, #tpu.memory_space<vmem>>, vector<1x8x32xf32>
    %4 = vector.shape_cast %3 : vector<1x8x32xf32> to vector<8x32xf32>
    %c0_3 = arith.constant 0 : index
    %c0_4 = arith.constant 0 : index
    %5 = vector.load %arg8[%c0_3, %c0_4] : memref<8x32xf32, #tpu.memory_space<vmem>>, vector<8x32xf32>
    %c0_5 = arith.constant 0 : index
    %c0_6 = arith.constant 0 : index
    %6 = vector.load %arg9[%c0_5, %c0_6] : memref<8x32xf32, #tpu.memory_space<vmem>>, vector<8x32xf32>
    %c0_7 = arith.constant 0 : index
    %c0_8 = arith.constant 0 : index
    %7 = vector.load %arg4[%c0_7, %c0_8] : memref<64x128xf32, #tpu.memory_space<vmem>>, vector<64x128xf32>
    %c0_9 = arith.constant 0 : index
    %c0_10 = arith.constant 0 : index
    %8 = vector.load %arg5[%c0_9, %c0_10] : memref<1x128xf32, #tpu.memory_space<vmem>>, vector<1x128xf32>
    %9 = tpu.concatenate %4, %5 in 1 : vector<8x32xf32>, vector<8x32xf32> -> vector<8x64xf32>
    %cst = arith.constant dense<0.000000e+00> : vector<8x128xf32>
    %10 = tpu.matmul %9, %7, %cst {dimension_numbers = #tpu.dot_dimension_numbers<[1], [0], [0], [1], [0, 0, 1, 1], [], []>} : vector<8x64xf32>, vector<64x128xf32>, vector<8x128xf32> -> vector<8x128xf32>
    %11 = vector.broadcast %8 : vector<1x128xf32> to vector<8x128xf32>
    %12 = arith.addf %10, %11 : vector<8x128xf32>
    %13 = vector.extract_strided_slice %12 {offsets = [0, 0], sizes = [8, 32], strides = [1, 1]} : vector<8x128xf32> to vector<8x32xf32>
    %14 = arith.negf %13 : vector<8x32xf32>
    %15 = math.exp %14 : vector<8x32xf32>
    %cst_11 = arith.constant 1.000000e+00 : f32
    %16 = vector.broadcast %cst_11 : f32 to vector<8x32xf32>
    %17 = arith.addf %16, %15 : vector<8x32xf32>
    %18 = arith.divf %16, %17 : vector<8x32xf32>
    %19 = vector.extract_strided_slice %12 {offsets = [0, 32], sizes = [8, 32], strides = [1, 1]} : vector<8x128xf32> to vector<8x32xf32>
    %20 = arith.negf %19 : vector<8x32xf32>
    %21 = math.exp %20 : vector<8x32xf32>
    %cst_12 = arith.constant 1.000000e+00 : f32
    %22 = vector.broadcast %cst_12 : f32 to vector<8x32xf32>
    %23 = arith.addf %22, %21 : vector<8x32xf32>
    %24 = arith.divf %22, %23 : vector<8x32xf32>
    %25 = vector.extract_strided_slice %12 {offsets = [0, 64], sizes = [8, 32], strides = [1, 1]} : vector<8x128xf32> to vector<8x32xf32>
    %26 = math.tanh %25 : vector<8x32xf32>
    %27 = vector.extract_strided_slice %12 {offsets = [0, 96], sizes = [8, 32], strides = [1, 1]} : vector<8x128xf32> to vector<8x32xf32>
    %28 = arith.negf %27 : vector<8x32xf32>
    %29 = math.exp %28 : vector<8x32xf32>
    %cst_13 = arith.constant 1.000000e+00 : f32
    %30 = vector.broadcast %cst_13 : f32 to vector<8x32xf32>
    %31 = arith.addf %30, %29 : vector<8x32xf32>
    %32 = arith.divf %30, %31 : vector<8x32xf32>
    %33 = arith.mulf %24, %6 : vector<8x32xf32>
    %34 = arith.mulf %18, %26 : vector<8x32xf32>
    %35 = arith.addf %33, %34 : vector<8x32xf32>
    %36 = math.tanh %35 : vector<8x32xf32>
    %37 = arith.mulf %32, %36 : vector<8x32xf32>
    %c0_14 = arith.constant 0 : index
    %c0_15 = arith.constant 0 : index
    %c0_16 = arith.constant 0 : index
    %38 = vector.load %arg6[%c0_14, %c0_15, %c0_16] : memref<1x8x32xf32, #tpu.memory_space<vmem>>, vector<1x8x32xf32>
    %39 = vector.shape_cast %38 : vector<1x8x32xf32> to vector<8x32xf32>
    %40 = vector.shape_cast %37 : vector<8x32xf32> to vector<1x8x32xf32>
    tpu.vector_store %arg6[%c0_14, %c0_15, %c0_16], %40 {strides = array<i32>} : memref<1x8x32xf32, #tpu.memory_space<vmem>>, vector<1x8x32xf32>,
    %c0_17 = arith.constant 0 : index
    %c0_18 = arith.constant 0 : index
    %41 = vector.load %arg8[%c0_17, %c0_18] : memref<8x32xf32, #tpu.memory_space<vmem>>, vector<8x32xf32>
    tpu.vector_store %arg8[%c0_17, %c0_18], %37 {strides = array<i32>} : memref<8x32xf32, #tpu.memory_space<vmem>>, vector<8x32xf32>,
    %c0_19 = arith.constant 0 : index
    %c0_20 = arith.constant 0 : index
    %42 = vector.load %arg9[%c0_19, %c0_20] : memref<8x32xf32, #tpu.memory_space<vmem>>, vector<8x32xf32>
    tpu.vector_store %arg9[%c0_19, %c0_20], %35 {strides = array<i32>} : memref<8x32xf32, #tpu.memory_space<vmem>>, vector<8x32xf32>,
    %c0_i32_21 = arith.constant 0 : i32
    %43 = arith.cmpi eq, %arg0, %c0_i32_21 : i32
    %44 = arith.extui %43 : i1 to i32
    %c0_i32_22 = arith.constant 0 : i32
    %45 = arith.cmpi ne, %44, %c0_i32_22 : i32
    scf.if %45 {
      %c0_23 = arith.constant 0 : index
      %c0_24 = arith.constant 0 : index
      %46 = vector.load %arg7[%c0_23, %c0_24] : memref<8x32xf32, #tpu.memory_space<vmem>>, vector<8x32xf32>
      tpu.vector_store %arg7[%c0_23, %c0_24], %35 {strides = array<i32>} : memref<8x32xf32, #tpu.memory_space<vmem>>, vector<8x32xf32>,
    } else {
    }
    return
  }
  func.func @transform_0(%arg0: i32) -> (i32, i32, i32) {
    %c0_i32 = arith.constant 0 : i32
    %c0_i32_0 = arith.constant 0 : i32
    %c0_i32_1 = arith.constant 0 : i32
    return %arg0, %c0_i32, %c0_i32_0 : i32, i32, i32
  }
  func.func @transform_1(%arg0: i32) -> (i32, i32) {
    %c0_i32 = arith.constant 0 : i32
    %c0_i32_0 = arith.constant 0 : i32
    %c0_i32_1 = arith.constant 0 : i32
    return %c0_i32, %c0_i32_0 : i32, i32
  }
  func.func @transform_2(%arg0: i32) -> (i32, i32) {
    %c0_i32 = arith.constant 0 : i32
    %c0_i32_0 = arith.constant 0 : i32
    %c0_i32_1 = arith.constant 0 : i32
    return %c0_i32, %c0_i32_0 : i32, i32
  }
  func.func @transform_3(%arg0: i32) -> (i32, i32) {
    %c0_i32 = arith.constant 0 : i32
    %c0_i32_0 = arith.constant 0 : i32
    %c0_i32_1 = arith.constant 0 : i32
    return %c0_i32, %c0_i32_0 : i32, i32
  }
  func.func @transform_4(%arg0: i32) -> (i32, i32) {
    %c0_i32 = arith.constant 0 : i32
    %c0_i32_0 = arith.constant 0 : i32
    %c0_i32_1 = arith.constant 0 : i32
    return %c0_i32, %c0_i32_0 : i32, i32
  }
  func.func @transform_5(%arg0: i32) -> (i32, i32, i32) {
    %c0_i32 = arith.constant 0 : i32
    %c0_i32_0 = arith.constant 0 : i32
    %c0_i32_1 = arith.constant 0 : i32
    return %arg0, %c0_i32, %c0_i32_0 : i32, i32, i32
  }
  func.func @transform_6(%arg0: i32) -> (i32, i32) {
    %c0_i32 = arith.constant 0 : i32
    %c0_i32_0 = arith.constant 0 : i32
    %c0_i32_1 = arith.constant 0 : i32
    return %c0_i32, %c0_i32_0 : i32, i32
  }
}

</mosaic_0001>

<bundles_post_ra>
// kernel: my_rnn_block_seq.1
= control target key start
LH: loop header
LB: loop body
LE: loop exit
PB: predicated region body
PF: predicated region fallthrough
CT: control target
= control target key end

     0   :  { %12 = vsyncpa [#allocation5], 0  ;;  %vm29_vm0 = vcmask 261120   ;;  %v309_v3 = vmov 0.0|0.0   ;;  %vm310_vm1 = vmmov 0   ;;  %v311_v7 = vmov 0.0   ;;  %s423_s0 = inlined_call_operand.vmem [shape: f32[1,8,32], index: 0, kind: input, shape index: {}]   ;;  %s424_s1 = inlined_call_operand.vmem [shape: f32[8,32], index: 1, kind: input, shape index: {}]   ;;  %s425_s2 = inlined_call_operand.vmem [shape: f32[8,32], index: 2, kind: input, shape index: {}]   ;;  %s426_s3 = inlined_call_operand.vmem [shape: f32[64,128], index: 3, kind: input, shape index: {}]   ;;  %s427_s4 = inlined_call_operand.vmem [shape: f32[1,128], index: 4, kind: input, shape index: {}]   ;;  %s428_s5 = inlined_call_operand.hbm [shape: f32[1,8,32], index: 5, kind: output, shape index: {0}]   ;;  %s429_s6 = inlined_call_operand.hbm [shape: f32[8,32], index: 6, kind: output, shape index: {1}]  }
   0x1   :  { %v28_v0 = vld [vmem:[%s424_s1] sm:$0xff]  ;;  %v37_v2 = vld [vmem:[%s426_s3 + $0x8] sm:$0xff]  ;;  %233 = vmatprep.subr.bf16.mxu0 %v309_v3  ;;  %v38_v5 = vld [vmem:[%s426_s3 + $0x10] sm:$0xff]  ;;  %230 = vmatprep.mubr.msk.f32.mxu0 %vm310_vm1, %v311_v7 }
   0x2   :  { %v36_v1 = vld [vmem:[%s426_s3] sm:$0xff]  ;;  %30 = vst.msk [vmem:[#allocation2] sm:$0xff] %vm29_vm0, %v28_v0  ;;  %v39_v6 = vld [vmem:[%s426_s3 + $0x18] sm:$0xff]  ;;  %v41_v11 = vld [vmem:[%s426_s3 + $0x28] sm:$0xff] }
   0x3   :  { %v234_v4 = vpack.c.bf16 %v37_v2, %v36_v1  ;;  %v237_v8 = vpack.c.bf16 %v39_v6, %v38_v5  ;;  %v31_v9 = vld [vmem:[%s425_s2] sm:$0xff] }
   0x4   :  { %v40_v10 = vld [vmem:[%s426_s3 + $0x20] sm:$0xff]  ;;  %32 = vst.msk [vmem:[#allocation3] sm:$0xff] %vm29_vm0, %v31_v9 }
   0x5   :  { %235 = vmatpush3.bf16.msra.mxu0 %v234_v4 }
   0x6   :  { %236 = vmatprep.subr.bf16.mxu0 %v309_v3 }
   0x7   :  { %13 = vsyncpa [#allocation7], 0  ;;  %v240_v12 = vpack.c.bf16 %v41_v11, %v40_v10  ;;  %v42_v14 = vld [vmem:[%s426_s3 + $0x30] sm:$0xff]  ;;  %v43_v15 = vld [vmem:[%s426_s3 + $0x38] sm:$0xff]  ;;  %s312_s15 = smov 32   ;;  %vm57_vm2 = vcmask 523264  }
   0x8   :  { %v243_v16 = vpack.c.bf16 %v43_v15, %v42_v14  ;;  %v33_v18 = vld [vmem:[%s423_s0] sm:$0xff]  ;;  %s313_s19 = smov 64   ;;  %s314_s0 = smov 96  }
   0x9   :  { %238 = vmatpush3.bf16.msra.mxu0 %v237_v8  ;;  %v34_v13 = vld [vmem:[#allocation2] sm:$0xff] }
   0xa   :  { %239 = vmatprep.subr.bf16.mxu0 %v309_v3  ;;  %46 = vrot.lane.b32.xlu0 %v34_v13, %s312_s15  ;;  %v202_v21 = vld [vmem:[%s427_s4] ss:$0 sm:$0xff]  ;;  %s315_s4 = smov [#allocation6]  }
   0xb   :  { %v35_v17 = vld [vmem:[#allocation3] sm:$0xff]  ;;  %s190_s20 = sshll.u32 %s315_s4, 4  ;;  %s191_s20 = int_to_ptr.vmem [resolvable:$true] %s190_s20 }
   0xc   :  { %139 = vrot.lane.b32.xlu1 %v35_v17, %s312_s15  ;;  %s261_s21 = scalar_lea.vmem %s191_s20, 128  ;;  %p266_p1 = scmp.lt.s32.totalorder %s191_s20, %s191_s20 }
   0xd   :  { %241 = vmatpush3.bf16.msra.mxu0 %v240_v12  ;;  %p262_p0 = scmp.ne.s32.totalorder %s191_s20, %s261_s21  ;;  %p267_p2 = scmp.lt.s32.totalorder %s261_s21, %s261_s21 }
   0xe   :  { %242 = vmatprep.subr.bf16.mxu0 %v309_v3 }
   0xf   :  { %p268_p3 = por %p267_p2, %p266_p1 }
  0x11   :  { %244 = vmatpush3.bf16.msra.mxu0 %v243_v16  ;;  %p269_p4 = pnand %p268_p3, %p262_p0 }
  0x7c   :  { %v47_v19 = vpop.permute.xlu0 %46 }
  0x7d   :  { %v50_v20 = vsel %vm29_vm0, %v33_v18, %v47_v19 }
  0x7e   :  { %231 = vmatmul.mubr.msk.f32.vlgmr.msra.gmra.mrb[0].mxu0 %vm57_vm2, %v50_v20  ;;  %v140_v32 = vpop.permute.xlu1 %139 }
 0x151   :  { %v127_v22 = vpop.f32.mrb[0].mxu0 }
 0x152   :  { %v128_v23 = vadd.f32 %v202_v21, %v127_v22  ;;  %v232_v24 = vpop.f32.mrb[1].mxu0 }
 0x154   :  { %253 = vtanh.f32 %v128_v23  ;;  %v204_v26 = vmul.f32 -1.442695, %v128_v23 }
 0x156   :  { %255 = vpow2.f32 %v204_v26 }
 0x15e   :  { %v254_v25 = vpop.eup %253 }
 0x15f   :  { %144 = vrot.lane.b32.xlu0 %v254_v25, %s313_s19 }
 0x160   :  { %v256_v27 = vpop.eup %255 }
 0x161   :  { %v134_v28 = vadd.f32 1.0, %v256_v27 }
 0x163   :  { %257 = vrcp.f32 %v134_v28 }
 0x16d   :  { %v258_v29 = vpop.eup %257 }
 0x16e   :  { %v142_v33 = vmul.f32 %v258_v29, %v140_v32 }
 0x1d1   :  { %v145_v30 = vpop.permute.xlu0 %144 }
 0x1d2   :  { %v147_v31 = vmul.f32 %v258_v29, %v145_v30 }
 0x1d4   :  { %149 = vrot.lane.b32.xlu1 %v147_v31, %s312_s15 }
 0x246   :  { %v150_v34 = vpop.permute.xlu1 %149 }
 0x247   :  { %v152_v35 = vadd.f32 %v150_v34, %v142_v33 }
 0x249   :  { %259 = vtanh.f32 %v152_v35 }
 0x253   :  { %v260_v36 = vpop.eup %259 }
 0x254   :  { %155 = vrot.lane.b32.xlu0 %v260_v36, %s313_s19 }
 0x258   :  { %166 = vrot.lane.b32.xlu0 %v152_v35, %s314_s0 }
 0x2c6   :  { %v156_v37 = vpop.permute.xlu0 %155 }
 0x2c7   :  { %v158_v38 = vmul.f32 %v258_v29, %v156_v37 }
 0x2c9   :  { %160 = vrot.lane.b32.xlu1 %v158_v38, %s312_s15 }
 0x2ca   :  { %v167_v39 = vpop.permute.xlu0 %166 }
 0x2cb   :  { %169 = vst.msk [vmem:[#allocation3] sm:$0xff] %vm29_vm0, %v167_v39  ;;  %173 = vst.msk [vmem:[#allocation6] sm:$0xff] %vm29_vm0, %v167_v39 }
 0x2cc   :  { %272 = shalt.err (!%p269_p4)
}
 0x2cd   :  { %s273_s24 = scalar_lea.hbm %s429_s6, 128 }
 0x2ce   :  { %p274_p5 = scmp.ne.s32.totalorder %s429_s6, %s273_s24  ;;  %p277_p6 = scmp.lt.u32.totalorder %s273_s24, %s429_s6 }
 0x2d0   :  { %p279_p7 = pnand %p277_p6, %p274_p5 }
 0x2d2   :  { %282 = shalt.err (!%p279_p7)
}
 0x2d3   :  { %193 = dma.vmem_to_hbm [thread:$0]  %s191_s20, 128, %s429_s6, [#allocation7]  }
 0x2d4   :  { %s316_s30 = smov [#allocation4]  }
 0x2d5   :  { %s180_s7 = sshll.u32 %s316_s30, 4  ;;  %s181_s7 = int_to_ptr.vmem [resolvable:$true] %s180_s7 }
 0x2d6   :  { %s283_s8 = scalar_lea.vmem %s181_s7, 128  ;;  %p288_p9 = scmp.lt.s32.totalorder %s181_s7, %s181_s7 }
 0x2d7   :  { %p284_p8 = scmp.ne.s32.totalorder %s181_s7, %s283_s8  ;;  %p289_p10 = scmp.lt.s32.totalorder %s283_s8, %s283_s8 }
 0x2d9   :  { %p290_p11 = por %p289_p10, %p288_p9 }
 0x2db   :  { %p291_p12 = pnand %p290_p11, %p284_p8 }
 0x33b   :  { %v161_v40 = vpop.permute.xlu1 %160 }
 0x33c   :  { %164 = vst.msk [vmem:[#allocation2] sm:$0xff] %vm29_vm0, %v161_v40  ;;  %163 = vst.msk [vmem:[#allocation4] sm:$0xff] %vm29_vm0, %v161_v40 }
 0x33d   :  { %294 = shalt.err (!%p291_p12)
}
 0x33e   :  { %s295_s11 = scalar_lea.hbm %s428_s5, 128 }
 0x33f   :  { %p296_p13 = scmp.ne.s32.totalorder %s428_s5, %s295_s11  ;;  %p299_p0 = scmp.lt.u32.totalorder %s295_s11, %s428_s5 }
 0x341   :  { %p301_p1 = pnand %p299_p0, %p296_p13 }
 0x343   :  { %304 = shalt.err (!%p301_p1)
}
 0x344   :  { %183 = dma.vmem_to_hbm [thread:$0]  %s181_s7, 128, %s428_s5, [#allocation5]  }
 0x345   :  { %305 = dma.done.wait [#allocation5], 128  }
 0x346   :  { %306 = vsyncadd [#allocation5], 4294967168 }
 0x347   :  { %307 = dma.done.wait [#allocation7], 128  }
 0x348   :  { %308 = vsyncadd [#allocation7], 4294967168 }
 0x349   :  { %200 = vsyncpa [#allocation5], 1 }
 0x34a   :  { %201 = vsyncpa [#allocation7], 1 }

</bundles_post_ra>
